<compile_context>
chip_gen: v6e
topology: v6e:2x2x1
jax: 0.10.0
libtpu: 0.0.40
codegen_flags: <defaults>
</compile_context>

<pallas_src>
import jax
import jax.numpy as jnp
from jax.experimental import pallas as pl
from jax.experimental.pallas import tpu as pltpu


# ----------------------------- Pallas kernel ------------------------------ #
def folded_affine_kernel(x_ref, w_ref, b_ref, o_ref):
    # x_ref: (B, D) flattened input rows
    # w_ref: (D, 2) folded weight chain
    # b_ref: (1, 2) folded bias (broadcasts over rows)
    # o_ref: (B, 2)
    o_ref[...] = (
        jnp.dot(x_ref[...], w_ref[...], preferred_element_type=jnp.float32)
        + b_ref[...]
    )


def _folded_affine_call(x_flat, w_fold, b_fold):
    """One pallas_call: (B, D) @ (D, 2) + (1, 2) -> (B, 2). Single VMEM block."""
    B = x_flat.shape[0]
    return pl.pallas_call(
        folded_affine_kernel,
        out_shape=jax.ShapeDtypeStruct((B, 2), jnp.float32),
        in_specs=[
            pl.BlockSpec(memory_space=pltpu.MemorySpace.VMEM),  # x_flat
            pl.BlockSpec(memory_space=pltpu.MemorySpace.VMEM),  # w_fold
            pl.BlockSpec(memory_space=pltpu.MemorySpace.VMEM),  # b_fold
        ],
        out_specs=pl.BlockSpec(memory_space=pltpu.MemorySpace.VMEM),
    )(x_flat, w_fold, b_fold)


# --------------------------- one-time weight fold -------------------------- #
def fold_params(params):
    """Compose linear_1 -> middle[*] -> output into (W_fold (D,2), b_fold (1,2)).

    Call this ONCE per parameter set (init / after a param update), not per
    forward call.
    """
    w1, b1, wm, bm, wo, bo = params
    W = w1.T.astype(jnp.float32)                  # (D, 5)
    b = b1.reshape(1, 5).astype(jnp.float32)      # (1, 5)
    for l in range(wm.shape[0]):                  # static small trip count
        W = W @ wm[l].T
        b = b @ wm[l].T + bm[l][None, :]
    W = W @ wo.T                                  # (D, 2)
    b = b @ wo.T + bo[None, :]                    # (1, 2)
    return W, b


# -------------------------------- forwards --------------------------------- #
def test_net_forward(x, folded):
    """Matches test_net.forward: x.view(-1) -> linear chain -> (2,)."""
    w_fold, b_fold = folded
    x_flat = x.reshape(1, -1).astype(jnp.float32)
    assert x_flat.shape[1] == w_fold.shape[0], "flattened x must match input_size"
    out = _folded_affine_call(x_flat, w_fold, b_fold)
    return out.reshape(2)


def test_net_forward_batched(xs, folded):
    """Batched variant: xs has a leading batch dim; each row is flattened
    independently (same per-row semantics as the module). One pallas_call."""
    w_fold, b_fold = folded
    B = xs.shape[0]
    x_flat = xs.reshape(B, -1).astype(jnp.float32)
    assert x_flat.shape[1] == w_fold.shape[0]
    return _folded_affine_call(x_flat, w_fold, b_fold)   # (B, 2)


# ------------------------------ init / reference --------------------------- #
def init_params(key, num_layers, input_size):
    """Deterministic synthetic init matching nn.Linear parameter shapes."""
    keys = jax.random.split(key, 6)
    w1 = jax.random.normal(keys[0], (5, input_size), jnp.float32) * 0.1
    b1 = jax.random.normal(keys[1], (5,), jnp.float32) * 0.1
    wm = jax.random.normal(keys[2], (num_layers, 5, 5), jnp.float32) * 0.1
    bm = jax.random.normal(keys[3], (num_layers, 5), jnp.float32) * 0.1
    wo = jax.random.normal(keys[4], (2, 5), jnp.float32) * 0.1
    bo = jax.random.normal(keys[5], (2,), jnp.float32) * 0.1
    return (w1, b1, wm, bm, wo, bo)


def reference_forward(x, params):
    """Pure-JAX reference mirroring the PyTorch layer-by-layer ordering."""
    w1, b1, wm, bm, wo, bo = params
    h = x.reshape(-1)
    h = h @ w1.T + b1
    for l in range(wm.shape[0]):
        h = h @ wm[l].T + bm[l]
    return h @ wo.T + bo


# ----------------------------------- main ----------------------------------- #
if __name__ == "__main__":
    num_layers = 2
    x_shape = (2, 4, 4)          # x.view(-1) -> 32 elements
    input_size = 2 * 4 * 4       # 32

    key = jax.random.PRNGKey(0)
    kx, kp, kb = jax.random.split(key, 3)
    x = jax.random.normal(kx, x_shape, jnp.float32)
    params = init_params(kp, num_layers, input_size)

    # One-time fold (amortized across all subsequent forward calls).
    folded = fold_params(params)
    folded = jax.tree_util.tree_map(jax.block_until_ready, folded)

    # Single-sample forward (matches the module's forward semantics).
    out = test_net_forward(x, folded)
    out = jax.block_until_ready(out)
    ref = reference_forward(x, params)
    assert out.shape == (2,)
    # Folding changes fp32 summation order slightly; stays well within tol.
    assert jnp.allclose(out, ref, atol=1e-5, rtol=1e-5), (out, ref)

    # Batched forward: same kernel, one launch for B rows (overhead amortized).
    B = 4
    xs = jax.random.normal(kb, (B,) + x_shape, jnp.float32)
    outs = jax.block_until_ready(test_net_forward_batched(xs, folded))
    refs = jnp.stack([reference_forward(xs[i], params) for i in range(B)])
    assert outs.shape == (B, 2)
    assert jnp.allclose(outs, refs, atol=1e-5, rtol=1e-5), (outs, refs)

    print("KERNEL_OK")
</pallas_src>

<mosaic_0001>
module attributes {stable_mosaic.version = 11 : i64} {
  func.func @folded_affine_kernel(%arg0: memref<1x32xf32, #tpu.memory_space<vmem>>, %arg1: memref<32x2xf32, #tpu.memory_space<vmem>>, %arg2: memref<1x2xf32, #tpu.memory_space<vmem>>, %arg3: memref<1x2xf32, #tpu.memory_space<vmem>>) attributes {dimension_semantics = [], scalar_prefetch = 0 : i64, scratch_operands = 0 : i64, tpu.core_type = #tpu.core_type<tc>} {
    %c0 = arith.constant 0 : index
    %c0_0 = arith.constant 0 : index
    %0 = vector.load %arg0[%c0, %c0_0] : memref<1x32xf32, #tpu.memory_space<vmem>>, vector<1x32xf32>
    %c0_1 = arith.constant 0 : index
    %c0_2 = arith.constant 0 : index
    %1 = vector.load %arg1[%c0_1, %c0_2] : memref<32x2xf32, #tpu.memory_space<vmem>>, vector<32x2xf32>
    %cst = arith.constant dense<0.000000e+00> : vector<1x2xf32>
    %2 = tpu.matmul %0, %1, %cst {dimension_numbers = #tpu.dot_dimension_numbers<[1], [0], [0], [1], [0, 0, 1, 1], [], []>} : vector<1x32xf32>, vector<32x2xf32>, vector<1x2xf32> -> vector<1x2xf32>
    %c0_3 = arith.constant 0 : index
    %c0_4 = arith.constant 0 : index
    %3 = vector.load %arg2[%c0_3, %c0_4] : memref<1x2xf32, #tpu.memory_space<vmem>>, vector<1x2xf32>
    %4 = arith.addf %2, %3 : vector<1x2xf32>
    %c0_5 = arith.constant 0 : index
    %c0_6 = arith.constant 0 : index
    %5 = vector.load %arg3[%c0_5, %c0_6] : memref<1x2xf32, #tpu.memory_space<vmem>>, vector<1x2xf32>
    tpu.vector_store %arg3[%c0_5, %c0_6], %4 {strides = array<i32>} : memref<1x2xf32, #tpu.memory_space<vmem>>, vector<1x2xf32>,
    return
  }
}

</mosaic_0001>

<bundles_post_ra>
// kernel: tpu_custom_call.1
= control target key start
LH: loop header
LB: loop body
LE: loop exit
PB: predicated region body
PF: predicated region fallthrough
CT: control target
= control target key end

     0   :  { %v153_v1 = vmov 0.0   ;;  %vm154_vm0 = vmmov 0   ;;  %s197_s0 = inlined_call_operand.vmem [shape: f32[1,32], index: 0, kind: input, shape index: {}]   ;;  %s198_s1 = inlined_call_operand.vmem [shape: f32[32,2], index: 1, kind: input, shape index: {}]   ;;  %s199_s2 = inlined_call_operand.vmem [shape: f32[1,2], index: 2, kind: input, shape index: {}]   ;;  %s200_s3 = inlined_call_operand.hbm [shape: f32[1,2], index: 3, kind: output, shape index: {}]  }
   0x1   :  { %v19_v0 = vld [vmem:[%s198_s1 + $0x18] sm:$0xff]  ;;  %117 = vmatprep.subr.mxu0 %v153_v1  ;;  %v18_v2 = vld [vmem:[%s198_s1 + $0x10] sm:$0xff]  ;;  %125 = vmatprep.mubr.msk.f32.mxu0 %vm154_vm0, %v153_v1 }
   0x2   :  { %118 = vmatpush3.msra.mxu0 %v19_v0 }
   0x3   :  { %8 = vsyncpa [#allocation3], 0  ;;  %119 = vmatprep.subr.mxu0 %v153_v1  ;;  %v17_v3 = vld [vmem:[%s198_s1 + $0x8] sm:$0xff]  ;;  %v16_v4 = vld [vmem:[%s198_s1] sm:$0xff]  ;;  %vm21_vm1 = vcmask 261120   ;;  %s155_s24 = smov [#allocation2]  }
   0x4   :  { %120 = vmatpush3.msra.mxu0 %v18_v2  ;;  %v15_v5 = vld [vmem:[%s197_s0] sm:$0x1]  ;;  %s103_s25 = sshll.u32 %s155_s24, 4  ;;  %vm95_vm2 = vcmask 8192   ;;  %s104_s25 = int_to_ptr.vmem [resolvable:$true] %s103_s25 }
   0x5   :  { %121 = vmatprep.subr.mxu0 %v153_v1  ;;  %v20_v6 = vld [vmem:[%s199_s2] sm:$0x1]  ;;  %s131_s1 = scalar_lea.vmem %s104_s25, 16  ;;  %s135_s26 = scalar_lea.vmem %s104_s25, 32 }
   0x6   :  { %122 = vmatpush3.msra.mxu0 %v17_v3  ;;  %p132_p0 = scmp.ne.s32.totalorder %s104_s25, %s131_s1  ;;  %p136_p1 = scmp.lt.s32.totalorder %s104_s25, %s104_s25 }
   0x7   :  { %123 = vmatprep.subr.mxu0 %v153_v1  ;;  %p137_p2 = scmp.lt.s32.totalorder %s135_s26, %s131_s1 }
   0x8   :  { %124 = vmatpush3.msra.mxu0 %v16_v4 }
   0x9   :  { %126 = vmatmul.mubr.msk.f32.vlgmr.msra.gmra.mxu0 %vm21_vm1, %v15_v5  ;;  %p138_p3 = por %p137_p2, %p136_p1 }
   0xb   :  { %p139_p4 = pnand %p138_p3, %p132_p0 }
  0xc9   :  { %v91_v7 = vpop.f32.mrf.mxu0 }
  0xca   :  { %v92_v8 = vadd.f32 %v91_v7, %v20_v6 }
  0xcb   :  { %v127_v9 = vpop.f32.mrf.mxu0 }
  0xcc   :  { %96 = vst.msk [vmem:[#allocation2] sm:$0x1] %vm95_vm2, %v92_v8 }
  0xcd   :  { %142 = shalt.err (!%p139_p4)
}
  0xce   :  { %106 = dma.vmem_to_hbm [thread:$0]  %s104_s25, 16, %s200_s3, [#allocation3]  }
  0xcf   :  { %151 = dma.done.wait [#allocation3], 16  }
  0xd0   :  { %152 = vsyncadd [#allocation3], 4294967280 }
  0xd1   :  { %110 = vsyncpa [#allocation3], 1 }

</bundles_post_ra>
